<compile_context>
chip_gen: v7x
topology: tpu7x:2x2x1
jax: 0.10.0
libtpu: 0.0.40
codegen_flags: <defaults>
</compile_context>

<pallas_src>
import math

import jax
import jax.numpy as jnp
from jax import lax
from jax.experimental import pallas as pl
from jax.experimental.pallas import tpu as pltpu

EPS = 1e-5


# ----------------------------------------------------------------------------
# Wrapper-side (static) weight packing
# ----------------------------------------------------------------------------
def _pack_cbn_mlps(cbn_layers):
    """Pack 3 CBN layers x {gamma, beta} MLPs into one 2-layer MLP.

    Output column order: [g1 | b1 | g2 | b2 | g3 | b3].
    Returns mlp_w1 (L, 6E), mlp_b1 (1, 6E), mlp_w2 (6E, total) block-diagonal,
    mlp_b2 (1, total).
    """
    w1s, b1s, w2_blocks, b2s, widths = [], [], [], [], []
    for fw1, fb1, fw2, fb2 in cbn_layers:
        for j in range(2):                       # 0 = gamma branch, 1 = beta
            w1s.append(fw1[j]); b1s.append(fb1[j])
            w2_blocks.append(fw2[j]); b2s.append(fb2[j])
            widths.append(fw2[j].shape[1])
    mlp_w1 = jnp.concatenate(w1s, axis=1)
    mlp_b1 = jnp.concatenate(b1s, axis=0)[None, :]
    total = sum(widths)
    rows, off = [], 0
    for blk, wd in zip(w2_blocks, widths):
        e = blk.shape[0]
        rows.append(jnp.zeros((e, total), jnp.float32).at[:, off:off + wd].set(blk))
        off += wd
    mlp_w2 = jnp.concatenate(rows, axis=0)
    mlp_b2 = jnp.concatenate(b2s, axis=0)[None, :]
    return mlp_w1, mlp_b1, mlp_w2, mlp_b2


def _pack_conv_weights(params, B, H, W):
    """Kron-packed conv weights for the lane-dense (B*H, W*C) row layout."""
    P = params["w1"].shape[1]
    eye_w = jnp.eye(W, dtype=jnp.float32)
    # 1x1 convs: block-diagonal over the W positions sharing the lane axis.
    w1_bd = jnp.kron(eye_w, params["w1"]).astype(jnp.bfloat16)     # (W*Cin, W*P)
    w3_bd = jnp.kron(eye_w, params["w3"]).astype(jnp.bfloat16)     # (W*P, W*Cout)
    # 3x3 conv: fold the dx taps into banded block-Toeplitz matrices (per dy).
    w2r = params["w2"].reshape(3, 3, P, P)                         # (dy, dx, ci, co)
    bands = []
    for dy in range(3):
        band = sum(jnp.kron(jnp.eye(W, k=1 - dx, dtype=jnp.float32), w2r[dy, dx])
                   for dx in range(3))                             # (W*P, W*P)
        bands.append(band)
    w2_cat = jnp.concatenate(bands, axis=1).astype(jnp.bfloat16)   # (W*P, 3*W*P)
    # Row-shift matrices for the dy = 0 / 2 taps: shift rows within each image,
    # zero at H borders, block-diagonal over batch (no leakage across images).
    s_up = jnp.kron(jnp.eye(B, dtype=jnp.float32),
                    jnp.eye(H, k=-1, dtype=jnp.float32))           # (B*H, B*H)
    s_dn = jnp.kron(jnp.eye(B, dtype=jnp.float32),
                    jnp.eye(H, k=1, dtype=jnp.float32))
    return w1_bd, w2_cat, w3_bd, s_up, s_dn


# ----------------------------------------------------------------------------
# Pallas wrapper + kernel
# ----------------------------------------------------------------------------
def bottleneck_pallas(x_nchw, lstm_emb, params):
    x = jnp.transpose(x_nchw, (0, 2, 3, 1)).astype(jnp.float32)    # NCHW -> NHWC
    B, H, W, Cin = x.shape
    P = params["w1"].shape[1]
    Cout = params["w3"].shape[1]
    assert Cout == Cin, "no downsample: residual add requires inplanes == planes*4"
    L = lstm_emb.shape[1]
    BH, WP, WC = B * H, W * P, W * Cout
    n_mid = float(B * H * W * P)          # element count for CBN1/CBN2 stats
    n_out = float(B * H * W * Cout)       # element count for CBN3 stats

    x_row = x.reshape(BH, W * Cin)        # lane-dense row layout (16, 128)
    w1_bd, w2_cat, w3_bd, s_up, s_dn = _pack_conv_weights(params, B, H, W)
    mlp_w1, mlp_b1, mlp_w2, mlp_b2 = _pack_cbn_mlps(
        (params["cbn1"], params["cbn2"], params["cbn3"]))

    def cbn_scale_shift(feat, gamma, beta, count):
        # One-pass global mean / unbiased variance (torch.mean / torch.var),
        # folded into per-(batch, channel) scale & shift; rsqrt -> EUP.
        s = jnp.sum(feat)
        ss = jnp.sum(feat * feat)
        mean = s / count
        var = (ss - count * mean * mean) / (count - 1.0)
        inv = lax.rsqrt(var + EPS)
        scale = gamma * inv                       # (B, C)
        shift = beta - mean * scale               # (B, C)
        return scale, shift

    def to_rows(v):
        # (B, C) -> (B*H, W*C): replicate along W (lanes), then H (sublanes).
        t = jnp.tile(v, (1, W))                                    # (B, W*C)
        return jnp.broadcast_to(t[:, None, :],
                                (B, H, t.shape[-1])).reshape(BH, t.shape[-1])

    def kernel(x_ref, emb_ref, w1_ref, w2_ref, w3_ref, su_ref, sd_ref,
               mw1_ref, mb1_ref, mw2_ref, mb2_ref, out_ref):
        xr = x_ref[...]                                            # (BH, W*Cin) f32

        # --- all six CBN MLP branches in two matmuls ----------------------
        hid = jnp.maximum(
            jnp.dot(emb_ref[...], mw1_ref[...],
                    preferred_element_type=jnp.float32) + mb1_ref[...], 0.0)
        d = jnp.dot(hid, mw2_ref[...],
                    preferred_element_type=jnp.float32) + mb2_ref[...]
        g1 = 1.0 + d[:, 0:P];          b1 = d[:, P:2 * P]
        g2 = 1.0 + d[:, 2 * P:3 * P];  b2 = d[:, 3 * P:4 * P]
        g3 = 1.0 + d[:, 4 * P:4 * P + Cout]
        b3 = d[:, 4 * P + Cout:4 * P + 2 * Cout]

        # --- conv1 (1x1) : one lane-dense bf16 matmul ----------------------
        h1 = jnp.dot(xr.astype(jnp.bfloat16), w1_ref[...],
                     preferred_element_type=jnp.float32)           # (BH, W*P)
        sc, sh = cbn_scale_shift(h1, g1, b1, n_mid)
        a1 = jnp.maximum(h1 * to_rows(sc) + to_rows(sh), 0.0)

        # --- conv2 (3x3, pad 1): one banded matmul + two 0/1 row shifts ----
        y = jnp.dot(a1.astype(jnp.bfloat16), w2_ref[...],
                    preferred_element_type=jnp.float32)            # (BH, 3*W*P)
        h2 = (jnp.dot(su_ref[...], y[:, 0:WP],
                      preferred_element_type=jnp.float32)
              + y[:, WP:2 * WP]
              + jnp.dot(sd_ref[...], y[:, 2 * WP:3 * WP],
                        preferred_element_type=jnp.float32))       # (BH, W*P)
        sc, sh = cbn_scale_shift(h2, g2, b2, n_mid)
        a2 = jnp.maximum(h2 * to_rows(sc) + to_rows(sh), 0.0)

        # --- conv3 (1x1) + CBN3 + residual + ReLU, fully lane-dense --------
        h3 = jnp.dot(a2.astype(jnp.bfloat16), w3_ref[...],
                     preferred_element_type=jnp.float32)           # (BH, W*Cout)
        sc, sh = cbn_scale_shift(h3, g3, b3, n_out)
        out_ref[...] = jnp.maximum(h3 * to_rows(sc) + to_rows(sh) + xr, 0.0)

    args = (x_row, lstm_emb.astype(jnp.float32), w1_bd, w2_cat, w3_bd,
            s_up, s_dn, mlp_w1, mlp_b1, mlp_w2, mlp_b2)

    flops = 2 * (BH * (W * Cin) * WP          # conv1 (block-diag)
                 + BH * WP * (3 * WP)         # conv2 banded matmul
                 + 2 * BH * BH * WP           # dy row shifts
                 + BH * WP * WC               # conv3 (block-diag)
                 + B * L * mlp_w1.shape[1]
                 + B * mlp_w2.shape[0] * mlp_w2.shape[1])
    bytes_accessed = int(sum(a.size * a.dtype.itemsize for a in args)
                         + BH * WC * 4)

    vmem = pl.BlockSpec(memory_space=pltpu.MemorySpace.VMEM)
    out_row = pl.pallas_call(
        kernel,
        out_shape=jax.ShapeDtypeStruct((BH, WC), jnp.float32),
        in_specs=[vmem] * len(args),
        out_specs=vmem,
        cost_estimate=pl.CostEstimate(flops=int(flops), transcendentals=3,
                                      bytes_accessed=bytes_accessed),
    )(*args)

    out = out_row.reshape(B, H, W, Cout)
    return jnp.transpose(out, (0, 3, 1, 2)), lstm_emb              # back to NCHW


# ----------------------------------------------------------------------------
# Pure-JAX reference (same bf16 conv-input precision as the kernel)
# ----------------------------------------------------------------------------
def bottleneck_ref(x_nchw, emb, params):
    x = jnp.transpose(x_nchw, (0, 2, 3, 1)).astype(jnp.float32)
    P = params["w1"].shape[1]
    hi = lax.Precision.HIGHEST
    bf = jnp.bfloat16

    def cbn_fc(e, fcw1, fcb1, fcw2, fcb2):
        hg = jnp.maximum(jnp.dot(e, fcw1[0], precision=hi) + fcb1[0], 0.0)
        dg = jnp.dot(hg, fcw2[0], precision=hi) + fcb2[0]
        hb = jnp.maximum(jnp.dot(e, fcw1[1], precision=hi) + fcb1[1], 0.0)
        db = jnp.dot(hb, fcw2[1], precision=hi) + fcb2[1]
        return 1.0 + dg, db

    def cbn_apply(feat, gamma, beta):
        n = feat.size
        mean = jnp.sum(feat) / n
        var = jnp.sum((feat - mean) ** 2) / (n - 1)   # torch.var (unbiased)
        norm = (feat - mean) / jnp.sqrt(var + EPS)
        return norm * gamma[:, None, None, :] + beta[:, None, None, :]

    h1 = jnp.einsum("bhwi,io->bhwo", x.astype(bf), params["w1"].astype(bf),
                    preferred_element_type=jnp.float32)
    g, b = cbn_fc(emb, *params["cbn1"])
    a1 = jnp.maximum(cbn_apply(h1, g, b), 0.0)

    w2_hwio = params["w2"].reshape(3, 3, P, P)
    h2 = lax.conv_general_dilated(a1.astype(bf), w2_hwio.astype(bf), (1, 1), "SAME",
                                  dimension_numbers=("NHWC", "HWIO", "NHWC"),
                                  preferred_element_type=jnp.float32)
    g, b = cbn_fc(emb, *params["cbn2"])
    a2 = jnp.maximum(cbn_apply(h2, g, b), 0.0)

    h3 = jnp.einsum("bhwi,io->bhwo", a2.astype(bf), params["w3"].astype(bf),
                    preferred_element_type=jnp.float32)
    g, b = cbn_fc(emb, *params["cbn3"])
    h3 = cbn_apply(h3, g, b)

    out = jnp.maximum(h3 + x, 0.0)
    return jnp.transpose(out, (0, 3, 1, 2)), emb


# ----------------------------------------------------------------------------
# Deterministic synthetic parameter init (mirrors the module's shapes;
# Linear layers: xavier-uniform weights, bias = 0.1, as in CBN.__init__).
# ----------------------------------------------------------------------------
def make_params(key, inplanes, planes, lstm_size, emb_size):
    P, Cout = planes, planes * 4
    keys = iter(jax.random.split(key, 16))

    def u(k, shape, a):
        return jax.random.uniform(k, shape, jnp.float32, -a, a)

    w1 = u(next(keys), (inplanes, P), 1.0 / math.sqrt(inplanes))      # 1x1 conv
    w2 = u(next(keys), (9, P, P), 1.0 / math.sqrt(9 * P))             # 3x3 conv (tap, in, out)
    w3 = u(next(keys), (P, Cout), 1.0 / math.sqrt(P))                 # 1x1 conv

    def cbn(c):
        a1 = math.sqrt(6.0 / (lstm_size + emb_size))
        a2 = math.sqrt(6.0 / (emb_size + c))
        fcw1 = u(next(keys), (2, lstm_size, emb_size), a1)   # [gamma, beta] branches
        fcb1 = jnp.full((2, emb_size), 0.1, jnp.float32)
        fcw2 = u(next(keys), (2, emb_size, c), a2)
        fcb2 = jnp.full((2, c), 0.1, jnp.float32)
        return (fcw1, fcb1, fcw2, fcb2)

    # TODO(synk): the original Bottleneck constructs CBN with missing
    # batch/channel/h/w args (a bug in the source); the base betas/gammas
    # parameters are zeros/ones and are folded in here as constants 0 and 1.
    return dict(w1=w1, w2=w2, w3=w3, cbn1=cbn(P), cbn2=cbn(P), cbn3=cbn(Cout))


if __name__ == "__main__":
    # Small shapes consistent with the module: inplanes == planes * expansion(=4),
    # stride = 1, downsample = None.
    B, inplanes, H, W = 2, 16, 8, 8
    planes = 4
    lstm_size, emb_size = 8, 8

    root = jax.random.PRNGKey(0)
    kx, kemb, kparam = jax.random.split(root, 3)
    x = jax.random.normal(kx, (B, inplanes, H, W), jnp.float32)       # NCHW like PyTorch
    lstm_emb = jax.random.normal(kemb, (B, lstm_size), jnp.float32)
    params = make_params(kparam, inplanes, planes, lstm_size, emb_size)

    out, emb_out = bottleneck_pallas(x, lstm_emb, params)
    jax.block_until_ready(out)

    ref, _ = bottleneck_ref(x, lstm_emb, params)
    assert out.shape == (B, planes * 4, H, W), out.shape
    assert jnp.allclose(out, ref, atol=1e-2, rtol=1e-2), \
        f"max abs err {jnp.max(jnp.abs(out - ref))}"

    print("KERNEL_OK")
</pallas_src>

<mosaic_0001>
module attributes {stable_mosaic.version = 11 : i64} {
  func.func @kernel(%arg0: memref<16x128xf32, #tpu.memory_space<vmem>>, %arg1: memref<2x8xf32, #tpu.memory_space<vmem>>, %arg2: memref<128x32xbf16, #tpu.memory_space<vmem>>, %arg3: memref<32x96xbf16, #tpu.memory_space<vmem>>, %arg4: memref<32x128xbf16, #tpu.memory_space<vmem>>, %arg5: memref<16x16xf32, #tpu.memory_space<vmem>>, %arg6: memref<16x16xf32, #tpu.memory_space<vmem>>, %arg7: memref<8x48xf32, #tpu.memory_space<vmem>>, %arg8: memref<1x48xf32, #tpu.memory_space<vmem>>, %arg9: memref<48x48xf32, #tpu.memory_space<vmem>>, %arg10: memref<1x48xf32, #tpu.memory_space<vmem>>, %arg11: memref<16x128xf32, #tpu.memory_space<vmem>>) attributes {dimension_semantics = [], scalar_prefetch = 0 : i64, scratch_operands = 0 : i64, tpu.core_type = #tpu.core_type<tc>} {
    %c0 = arith.constant 0 : index
    %c0_0 = arith.constant 0 : index
    %0 = vector.load %arg0[%c0, %c0_0] : memref<16x128xf32, #tpu.memory_space<vmem>>, vector<16x128xf32>
    %c0_1 = arith.constant 0 : index
    %c0_2 = arith.constant 0 : index
    %1 = vector.load %arg1[%c0_1, %c0_2] : memref<2x8xf32, #tpu.memory_space<vmem>>, vector<2x8xf32>
    %c0_3 = arith.constant 0 : index
    %c0_4 = arith.constant 0 : index
    %2 = vector.load %arg7[%c0_3, %c0_4] : memref<8x48xf32, #tpu.memory_space<vmem>>, vector<8x48xf32>
    %cst = arith.constant dense<0.000000e+00> : vector<2x48xf32>
    %3 = tpu.matmul %1, %2, %cst {dimension_numbers = #tpu.dot_dimension_numbers<[1], [0], [0], [1], [0, 0, 1, 1], [], []>} : vector<2x8xf32>, vector<8x48xf32>, vector<2x48xf32> -> vector<2x48xf32>
    %c0_5 = arith.constant 0 : index
    %c0_6 = arith.constant 0 : index
    %4 = vector.load %arg8[%c0_5, %c0_6] : memref<1x48xf32, #tpu.memory_space<vmem>>, vector<1x48xf32>
    %5 = vector.broadcast %4 : vector<1x48xf32> to vector<2x48xf32>
    %6 = arith.addf %3, %5 : vector<2x48xf32>
    %cst_7 = arith.constant 0.000000e+00 : f32
    %7 = vector.broadcast %cst_7 : f32 to vector<2x48xf32>
    %8 = arith.maximumf %6, %7 : vector<2x48xf32>
    %c0_8 = arith.constant 0 : index
    %c0_9 = arith.constant 0 : index
    %9 = vector.load %arg9[%c0_8, %c0_9] : memref<48x48xf32, #tpu.memory_space<vmem>>, vector<48x48xf32>
    %cst_10 = arith.constant dense<0.000000e+00> : vector<2x48xf32>
    %10 = tpu.matmul %8, %9, %cst_10 {dimension_numbers = #tpu.dot_dimension_numbers<[1], [0], [0], [1], [0, 0, 1, 1], [], []>} : vector<2x48xf32>, vector<48x48xf32>, vector<2x48xf32> -> vector<2x48xf32>
    %c0_11 = arith.constant 0 : index
    %c0_12 = arith.constant 0 : index
    %11 = vector.load %arg10[%c0_11, %c0_12] : memref<1x48xf32, #tpu.memory_space<vmem>>, vector<1x48xf32>
    %12 = vector.broadcast %11 : vector<1x48xf32> to vector<2x48xf32>
    %13 = arith.addf %10, %12 : vector<2x48xf32>
    %14 = vector.extract_strided_slice %13 {offsets = [0, 0], sizes = [2, 4], strides = [1, 1]} : vector<2x48xf32> to vector<2x4xf32>
    %cst_13 = arith.constant 1.000000e+00 : f32
    %15 = vector.broadcast %cst_13 : f32 to vector<2x4xf32>
    %16 = arith.addf %15, %14 : vector<2x4xf32>
    %17 = vector.extract_strided_slice %13 {offsets = [0, 4], sizes = [2, 4], strides = [1, 1]} : vector<2x48xf32> to vector<2x4xf32>
    %18 = vector.extract_strided_slice %13 {offsets = [0, 8], sizes = [2, 4], strides = [1, 1]} : vector<2x48xf32> to vector<2x4xf32>
    %cst_14 = arith.constant 1.000000e+00 : f32
    %19 = vector.broadcast %cst_14 : f32 to vector<2x4xf32>
    %20 = arith.addf %19, %18 : vector<2x4xf32>
    %21 = vector.extract_strided_slice %13 {offsets = [0, 12], sizes = [2, 4], strides = [1, 1]} : vector<2x48xf32> to vector<2x4xf32>
    %22 = vector.extract_strided_slice %13 {offsets = [0, 16], sizes = [2, 16], strides = [1, 1]} : vector<2x48xf32> to vector<2x16xf32>
    %cst_15 = arith.constant 1.000000e+00 : f32
    %23 = vector.broadcast %cst_15 : f32 to vector<2x16xf32>
    %24 = arith.addf %23, %22 : vector<2x16xf32>
    %25 = vector.extract_strided_slice %13 {offsets = [0, 32], sizes = [2, 16], strides = [1, 1]} : vector<2x48xf32> to vector<2x16xf32>
    %26 = arith.truncf %0 : vector<16x128xf32> to vector<16x128xbf16>
    %c0_16 = arith.constant 0 : index
    %c0_17 = arith.constant 0 : index
    %27 = vector.load %arg2[%c0_16, %c0_17] : memref<128x32xbf16, #tpu.memory_space<vmem>>, vector<128x32xbf16>
    %cst_18 = arith.constant dense<0.000000e+00> : vector<16x32xf32>
    %28 = tpu.matmul %26, %27, %cst_18 {dimension_numbers = #tpu.dot_dimension_numbers<[1], [0], [0], [1], [0, 0, 1, 1], [], []>} : vector<16x128xbf16>, vector<128x32xbf16>, vector<16x32xf32> -> vector<16x32xf32>
    %29 = vector.shape_cast %28 : vector<16x32xf32> to vector<1x16x32xf32>
    %cst_19 = arith.constant dense<0.000000e+00> : vector<1xf32>
    %30 = vector.multi_reduction <add>, %29, %cst_19 [1, 2] : vector<1x16x32xf32> to vector<1xf32>
    %31 = vector.shape_cast %30 : vector<1xf32> to vector<1x1x1xf32>
    %32 = vector.extract %31[0, 0, 0] : f32 from vector<1x1x1xf32>
    %33 = arith.mulf %28, %28 : vector<16x32xf32>
    %34 = vector.shape_cast %33 : vector<16x32xf32> to vector<1x16x32xf32>
    %cst_20 = arith.constant dense<0.000000e+00> : vector<1xf32>
    %35 = vector.multi_reduction <add>, %34, %cst_20 [1, 2] : vector<1x16x32xf32> to vector<1xf32>
    %36 = vector.shape_cast %35 : vector<1xf32> to vector<1x1x1xf32>
    %37 = vector.extract %36[0, 0, 0] : f32 from vector<1x1x1xf32>
    %cst_21 = arith.constant 5.120000e+02 : f32
    %38 = arith.divf %32, %cst_21 : f32
    %cst_22 = arith.constant 5.120000e+02 : f32
    %39 = arith.mulf %cst_22, %38 : f32
    %40 = arith.mulf %39, %38 : f32
    %41 = arith.subf %37, %40 : f32
    %cst_23 = arith.constant 5.110000e+02 : f32
    %42 = arith.divf %41, %cst_23 : f32
    %cst_24 = arith.constant 9.99999974E-6 : f32
    %43 = arith.addf %42, %cst_24 : f32
    %44 = math.rsqrt %43 : f32
    %45 = vector.broadcast %44 : f32 to vector<2x4xf32>
    %46 = arith.mulf %16, %45 : vector<2x4xf32>
    %47 = vector.broadcast %38 : f32 to vector<2x4xf32>
    %48 = arith.mulf %47, %46 : vector<2x4xf32>
    %49 = arith.subf %17, %48 : vector<2x4xf32>
    %50 = tpu.concatenate %46, %46, %46, %46, %46, %46, %46, %46 in 1 : vector<2x4xf32>, vector<2x4xf32>, vector<2x4xf32>, vector<2x4xf32>, vector<2x4xf32>, vector<2x4xf32>, vector<2x4xf32>, vector<2x4xf32> -> vector<2x32xf32>
    %51 = vector.shape_cast %50 : vector<2x32xf32> to vector<2x1x32xf32>
    %52 = vector.shape_cast %51 : vector<2x1x32xf32> to vector<2x1x32xf32>
    %53 = vector.broadcast %52 : vector<2x1x32xf32> to vector<2x8x32xf32>
    %54 = vector.shape_cast %53 : vector<2x8x32xf32> to vector<16x32xf32>
    %55 = arith.mulf %28, %54 : vector<16x32xf32>
    %56 = tpu.concatenate %49, %49, %49, %49, %49, %49, %49, %49 in 1 : vector<2x4xf32>, vector<2x4xf32>, vector<2x4xf32>, vector<2x4xf32>, vector<2x4xf32>, vector<2x4xf32>, vector<2x4xf32>, vector<2x4xf32> -> vector<2x32xf32>
    %57 = vector.shape_cast %56 : vector<2x32xf32> to vector<2x1x32xf32>
    %58 = vector.shape_cast %57 : vector<2x1x32xf32> to vector<2x1x32xf32>
    %59 = vector.broadcast %58 : vector<2x1x32xf32> to vector<2x8x32xf32>
    %60 = vector.shape_cast %59 : vector<2x8x32xf32> to vector<16x32xf32>
    %61 = arith.addf %55, %60 : vector<16x32xf32>
    %cst_25 = arith.constant 0.000000e+00 : f32
    %62 = vector.broadcast %cst_25 : f32 to vector<16x32xf32>
    %63 = arith.maximumf %61, %62 : vector<16x32xf32>
    %64 = arith.truncf %63 : vector<16x32xf32> to vector<16x32xbf16>
    %c0_26 = arith.constant 0 : index
    %c0_27 = arith.constant 0 : index
    %65 = vector.load %arg3[%c0_26, %c0_27] : memref<32x96xbf16, #tpu.memory_space<vmem>>, vector<32x96xbf16>
    %cst_28 = arith.constant dense<0.000000e+00> : vector<16x96xf32>
    %66 = tpu.matmul %64, %65, %cst_28 {dimension_numbers = #tpu.dot_dimension_numbers<[1], [0], [0], [1], [0, 0, 1, 1], [], []>} : vector<16x32xbf16>, vector<32x96xbf16>, vector<16x96xf32> -> vector<16x96xf32>
    %c0_29 = arith.constant 0 : index
    %c0_30 = arith.constant 0 : index
    %67 = vector.load %arg5[%c0_29, %c0_30] : memref<16x16xf32, #tpu.memory_space<vmem>>, vector<16x16xf32>
    %68 = vector.extract_strided_slice %66 {offsets = [0, 0], sizes = [16, 32], strides = [1, 1]} : vector<16x96xf32> to vector<16x32xf32>
    %cst_31 = arith.constant dense<0.000000e+00> : vector<16x32xf32>
    %69 = tpu.matmul %67, %68, %cst_31 {dimension_numbers = #tpu.dot_dimension_numbers<[1], [0], [0], [1], [0, 0, 1, 1], [], []>} : vector<16x16xf32>, vector<16x32xf32>, vector<16x32xf32> -> vector<16x32xf32>
    %70 = vector.extract_strided_slice %66 {offsets = [0, 32], sizes = [16, 32], strides = [1, 1]} : vector<16x96xf32> to vector<16x32xf32>
    %71 = arith.addf %69, %70 : vector<16x32xf32>
    %c0_32 = arith.constant 0 : index
    %c0_33 = arith.constant 0 : index
    %72 = vector.load %arg6[%c0_32, %c0_33] : memref<16x16xf32, #tpu.memory_space<vmem>>, vector<16x16xf32>
    %73 = vector.extract_strided_slice %66 {offsets = [0, 64], sizes = [16, 32], strides = [1, 1]} : vector<16x96xf32> to vector<16x32xf32>
    %cst_34 = arith.constant dense<0.000000e+00> : vector<16x32xf32>
    %74 = tpu.matmul %72, %73, %cst_34 {dimension_numbers = #tpu.dot_dimension_numbers<[1], [0], [0], [1], [0, 0, 1, 1], [], []>} : vector<16x16xf32>, vector<16x32xf32>, vector<16x32xf32> -> vector<16x32xf32>
    %75 = arith.addf %71, %74 : vector<16x32xf32>
    %76 = vector.shape_cast %75 : vector<16x32xf32> to vector<1x16x32xf32>
    %cst_35 = arith.constant dense<0.000000e+00> : vector<1xf32>
    %77 = vector.multi_reduction <add>, %76, %cst_35 [1, 2] : vector<1x16x32xf32> to vector<1xf32>
    %78 = vector.shape_cast %77 : vector<1xf32> to vector<1x1x1xf32>
    %79 = vector.extract %78[0, 0, 0] : f32 from vector<1x1x1xf32>
    %80 = arith.mulf %75, %75 : vector<16x32xf32>
    %81 = vector.shape_cast %80 : vector<16x32xf32> to vector<1x16x32xf32>
    %cst_36 = arith.constant dense<0.000000e+00> : vector<1xf32>
    %82 = vector.multi_reduction <add>, %81, %cst_36 [1, 2] : vector<1x16x32xf32> to vector<1xf32>
    %83 = vector.shape_cast %82 : vector<1xf32> to vector<1x1x1xf32>
    %84 = vector.extract %83[0, 0, 0] : f32 from vector<1x1x1xf32>
    %cst_37 = arith.constant 5.120000e+02 : f32
    %85 = arith.divf %79, %cst_37 : f32
    %cst_38 = arith.constant 5.120000e+02 : f32
    %86 = arith.mulf %cst_38, %85 : f32
    %87 = arith.mulf %86, %85 : f32
    %88 = arith.subf %84, %87 : f32
    %cst_39 = arith.constant 5.110000e+02 : f32
    %89 = arith.divf %88, %cst_39 : f32
    %cst_40 = arith.constant 9.99999974E-6 : f32
    %90 = arith.addf %89, %cst_40 : f32
    %91 = math.rsqrt %90 : f32
    %92 = vector.broadcast %91 : f32 to vector<2x4xf32>
    %93 = arith.mulf %20, %92 : vector<2x4xf32>
    %94 = vector.broadcast %85 : f32 to vector<2x4xf32>
    %95 = arith.mulf %94, %93 : vector<2x4xf32>
    %96 = arith.subf %21, %95 : vector<2x4xf32>
    %97 = tpu.concatenate %93, %93, %93, %93, %93, %93, %93, %93 in 1 : vector<2x4xf32>, vector<2x4xf32>, vector<2x4xf32>, vector<2x4xf32>, vector<2x4xf32>, vector<2x4xf32>, vector<2x4xf32>, vector<2x4xf32> -> vector<2x32xf32>
    %98 = vector.shape_cast %97 : vector<2x32xf32> to vector<2x1x32xf32>
    %99 = vector.shape_cast %98 : vector<2x1x32xf32> to vector<2x1x32xf32>
    %100 = vector.broadcast %99 : vector<2x1x32xf32> to vector<2x8x32xf32>
    %101 = vector.shape_cast %100 : vector<2x8x32xf32> to vector<16x32xf32>
    %102 = arith.mulf %75, %101 : vector<16x32xf32>
    %103 = tpu.concatenate %96, %96, %96, %96, %96, %96, %96, %96 in 1 : vector<2x4xf32>, vector<2x4xf32>, vector<2x4xf32>, vector<2x4xf32>, vector<2x4xf32>, vector<2x4xf32>, vector<2x4xf32>, vector<2x4xf32> -> vector<2x32xf32>
    %104 = vector.shape_cast %103 : vector<2x32xf32> to vector<2x1x32xf32>
    %105 = vector.shape_cast %104 : vector<2x1x32xf32> to vector<2x1x32xf32>
    %106 = vector.broadcast %105 : vector<2x1x32xf32> to vector<2x8x32xf32>
    %107 = vector.shape_cast %106 : vector<2x8x32xf32> to vector<16x32xf32>
    %108 = arith.addf %102, %107 : vector<16x32xf32>
    %cst_41 = arith.constant 0.000000e+00 : f32
    %109 = vector.broadcast %cst_41 : f32 to vector<16x32xf32>
    %110 = arith.maximumf %108, %109 : vector<16x32xf32>
    %111 = arith.truncf %110 : vector<16x32xf32> to vector<16x32xbf16>
    %c0_42 = arith.constant 0 : index
    %c0_43 = arith.constant 0 : index
    %112 = vector.load %arg4[%c0_42, %c0_43] : memref<32x128xbf16, #tpu.memory_space<vmem>>, vector<32x128xbf16>
    %cst_44 = arith.constant dense<0.000000e+00> : vector<16x128xf32>
    %113 = tpu.matmul %111, %112, %cst_44 {dimension_numbers = #tpu.dot_dimension_numbers<[1], [0], [0], [1], [0, 0, 1, 1], [], []>} : vector<16x32xbf16>, vector<32x128xbf16>, vector<16x128xf32> -> vector<16x128xf32>
    %114 = vector.shape_cast %113 : vector<16x128xf32> to vector<1x16x128xf32>
    %cst_45 = arith.constant dense<0.000000e+00> : vector<1xf32>
    %115 = vector.multi_reduction <add>, %114, %cst_45 [1, 2] : vector<1x16x128xf32> to vector<1xf32>
    %116 = vector.shape_cast %115 : vector<1xf32> to vector<1x1x1xf32>
    %117 = vector.extract %116[0, 0, 0] : f32 from vector<1x1x1xf32>
    %118 = arith.mulf %113, %113 : vector<16x128xf32>
    %119 = vector.shape_cast %118 : vector<16x128xf32> to vector<1x16x128xf32>
    %cst_46 = arith.constant dense<0.000000e+00> : vector<1xf32>
    %120 = vector.multi_reduction <add>, %119, %cst_46 [1, 2] : vector<1x16x128xf32> to vector<1xf32>
    %121 = vector.shape_cast %120 : vector<1xf32> to vector<1x1x1xf32>
    %122 = vector.extract %121[0, 0, 0] : f32 from vector<1x1x1xf32>
    %cst_47 = arith.constant 2.048000e+03 : f32
    %123 = arith.divf %117, %cst_47 : f32
    %cst_48 = arith.constant 2.048000e+03 : f32
    %124 = arith.mulf %cst_48, %123 : f32
    %125 = arith.mulf %124, %123 : f32
    %126 = arith.subf %122, %125 : f32
    %cst_49 = arith.constant 2.047000e+03 : f32
    %127 = arith.divf %126, %cst_49 : f32
    %cst_50 = arith.constant 9.99999974E-6 : f32
    %128 = arith.addf %127, %cst_50 : f32
    %129 = math.rsqrt %128 : f32
    %130 = vector.broadcast %129 : f32 to vector<2x16xf32>
    %131 = arith.mulf %24, %130 : vector<2x16xf32>
    %132 = vector.broadcast %123 : f32 to vector<2x16xf32>
    %133 = arith.mulf %132, %131 : vector<2x16xf32>
    %134 = arith.subf %25, %133 : vector<2x16xf32>
    %135 = tpu.concatenate %131, %131, %131, %131, %131, %131, %131, %131 in 1 : vector<2x16xf32>, vector<2x16xf32>, vector<2x16xf32>, vector<2x16xf32>, vector<2x16xf32>, vector<2x16xf32>, vector<2x16xf32>, vector<2x16xf32> -> vector<2x128xf32>
    %136 = vector.shape_cast %135 : vector<2x128xf32> to vector<2x1x128xf32>
    %137 = vector.shape_cast %136 : vector<2x1x128xf32> to vector<2x1x128xf32>
    %138 = vector.broadcast %137 : vector<2x1x128xf32> to vector<2x8x128xf32>
    %139 = vector.shape_cast %138 : vector<2x8x128xf32> to vector<16x128xf32>
    %140 = arith.mulf %113, %139 : vector<16x128xf32>
    %141 = tpu.concatenate %134, %134, %134, %134, %134, %134, %134, %134 in 1 : vector<2x16xf32>, vector<2x16xf32>, vector<2x16xf32>, vector<2x16xf32>, vector<2x16xf32>, vector<2x16xf32>, vector<2x16xf32>, vector<2x16xf32> -> vector<2x128xf32>
    %142 = vector.shape_cast %141 : vector<2x128xf32> to vector<2x1x128xf32>
    %143 = vector.shape_cast %142 : vector<2x1x128xf32> to vector<2x1x128xf32>
    %144 = vector.broadcast %143 : vector<2x1x128xf32> to vector<2x8x128xf32>
    %145 = vector.shape_cast %144 : vector<2x8x128xf32> to vector<16x128xf32>
    %146 = arith.addf %140, %145 : vector<16x128xf32>
    %147 = arith.addf %146, %0 : vector<16x128xf32>
    %cst_51 = arith.constant 0.000000e+00 : f32
    %148 = vector.broadcast %cst_51 : f32 to vector<16x128xf32>
    %149 = arith.maximumf %147, %148 : vector<16x128xf32>
    %c0_52 = arith.constant 0 : index
    %c0_53 = arith.constant 0 : index
    %150 = vector.load %arg11[%c0_52, %c0_53] : memref<16x128xf32, #tpu.memory_space<vmem>>, vector<16x128xf32>
    tpu.vector_store %arg11[%c0_52, %c0_53], %149 {strides = array<i32>} : memref<16x128xf32, #tpu.memory_space<vmem>>, vector<16x128xf32>,
    return
  }
}

</mosaic_0001>

<bundles_post_ra>
// kernel: tpu_custom_call.1
= control target key start
LH: loop header
LB: loop body
LE: loop exit
PB: predicated region body
PF: predicated region fallthrough
CT: control target
= control target key end

     0   :  { %16 = vsyncpa [#allocation3], 0  ;;  %s1902_s0 = inlined_call_operand.vmem [shape: f32[16,128], index: 0, kind: input, shape index: {}]   ;;  %s1903_s1 = inlined_call_operand.vmem [shape: f32[2,8], index: 1, kind: input, shape index: {}]   ;;  %s1904_s2 = inlined_call_operand.vmem [shape: bf16[128,32], index: 2, kind: input, shape index: {}]   ;;  %s1905_s3 = inlined_call_operand.vmem [shape: bf16[32,96], index: 3, kind: input, shape index: {}]   ;;  %s1906_s4 = inlined_call_operand.hbm [shape: bf16[32,128], index: 4, kind: input, shape index: {}]   ;;  %s1907_s5 = inlined_call_operand.vmem [shape: f32[16,16], index: 5, kind: input, shape index: {}]   ;;  %s1908_s6 = inlined_call_operand.hbm [shape: f32[16,16], index: 6, kind: input, shape index: {}]   ;;  %s1909_s7 = inlined_call_operand.vmem [shape: f32[8,48], index: 7, kind: input, shape index: {}]   ;;  %s1910_s8 = inlined_call_operand.vmem [shape: f32[1,48], index: 8, kind: input, shape index: {}]   ;;  %s1911_s9 = inlined_call_operand.vmem [shape: f32[48,48], index: 9, kind: input, shape index: {}]   ;;  %s1912_s10 = inlined_call_operand.vmem [shape: f32[1,48], index: 10, kind: input, shape index: {}]   ;;  %s1913_s11 = inlined_call_operand.hbm [shape: f32[16,128], index: 11, kind: output, shape index: {}]  }
   0x1   :  { %17 = vsyncpa [#allocation6], 0 }
   0x2   :  { %18 = vsyncpa [#allocation4], 0  ;;  %s1497_s17 = smov [#allocation2]   ;;  %s1425_s21 = scalar_lea.hbm %s1906_s4, 256 }
   0x3   :  { %s32_s18 = sshll.u32 %s1497_s17, 4  ;;  %p1426_p0 = scmp.ne.s32.totalorder %s1906_s4, %s1425_s21  ;;  %s33_s18 = int_to_ptr.vmem [resolvable:$true] %s32_s18 }
   0x4   :  { %p1429_p1 = scmp.lt.u32.totalorder %s1425_s21, %s1906_s4 }
   0x6   :  { %p1431_p2 = pnand %p1429_p1, %p1426_p0 }
   0x8   :  { %1434 = shalt.err (!%p1431_p2)
}
   0x9   :  { %s1435_s26 = scalar_lea.vmem %s33_s18, 256  ;;  %p1440_p4 = scmp.lt.s32.totalorder %s33_s18, %s33_s18 }
   0xa   :  { %p1436_p3 = scmp.ne.s32.totalorder %s33_s18, %s1435_s26  ;;  %p1441_p5 = scmp.lt.s32.totalorder %s1435_s26, %s1435_s26 }
   0xc   :  { %p1442_p6 = por %p1441_p5, %p1440_p4 }
   0xe   :  { %p1443_p7 = pnand %p1442_p6, %p1436_p3 }
  0x10   :  { %1446 = shalt.err (!%p1443_p7)
}
  0x11   :  { %s1498_s27 = smov 64   ;;  %s1499_s28 = smov 4  }
  0x12   :  { %38 = dma.hbm_to_vmem [thread:$0]  %s1906_s4, 256, %s33_s18, [#allocation3], %s1498_s27, %s1498_s27, %s1499_s28  }
  0x13   :  { %s1500_s12 = smov [#allocation5]   ;;  %s1447_s16 = scalar_lea.hbm %s1908_s6, 256 }
  0x14   :  { %s46_s13 = sshll.u32 %s1500_s12, 4  ;;  %p1448_p8 = scmp.ne.s32.totalorder %s1908_s6, %s1447_s16  ;;  %s47_s13 = int_to_ptr.vmem [resolvable:$true] %s46_s13 }
  0x15   :  { %p1451_p9 = scmp.lt.u32.totalorder %s1447_s16, %s1908_s6 }
  0x17   :  { %p1453_p10 = pnand %p1451_p9, %p1448_p8 }
  0x19   :  { %1456 = shalt.err (!%p1453_p10)
}
  0x1a   :  { %s1457_s22 = scalar_lea.vmem %s47_s13, 256  ;;  %p1462_p12 = scmp.lt.s32.totalorder %s47_s13, %s47_s13 }
  0x1b   :  { %p1458_p11 = scmp.ne.s32.totalorder %s47_s13, %s1457_s22  ;;  %p1463_p13 = scmp.lt.s32.totalorder %s1457_s22, %s1457_s22 }
  0x1d   :  { %p1464_p0 = por %p1463_p13, %p1462_p12 }
  0x1f   :  { %p1465_p1 = pnand %p1464_p0, %p1458_p11 }
  0x21   :  { %1468 = shalt.err (!%p1465_p1)
}
  0x22   :  { %s1501_s4 = smov 128   ;;  %s1502_s18 = smov 8  }
  0x23   :  { %52 = dma.hbm_to_vmem [thread:$0]  %s1908_s6, 256, %s47_s13, [#allocation6], %s1501_s4, %s1501_s4, %s1502_s18  }
  0x24   :  { %1491 = dma.done.wait [#allocation3], 256  }
  0x25   :  { %1492 = vsyncadd [#allocation3], 4294967040 }
  0x26   :  { %1493 = dma.done.wait [#allocation6], 256  }
  0x27   :  { %1494 = vsyncadd [#allocation6], 4294967040  ;;  %v1503_v0 = vmov 0.0   ;;  %vm1504_vm0 = vmmov 0   ;;  %v1505_v1 = vmov 0.0|0.0   ;;  %vm79_vm1 = vcmask 64512  }
  0x28   :  { %1269 = vmatprep.subr.mxu0 %v1503_v0  ;;  %1271 = vmatprep.mubr.msk.f32.mxu0 %vm1504_vm0, %v1503_v0  ;;  %v71_v2 = vld [vmem:[%s1909_s7] sm:$0xff]  ;;  %v1408_v5 = vld [vmem:[%s1904_s2 + $0x8] sm:$0xff]   ;;  %v1409_v6 = vld [vmem:[%s1904_s2 + $0x10] sm:$0xff]   ;;  %vm167_vm2 = vcmask 392192   ;;  %vm348_vm3 = vcmask 261120   ;;  %s1506_s14 = smov 24  }
  0x29   :  { %1339 = vmatprep.subr.bf16.mxu1 %v1505_v1  ;;  %1286 = vmatprep.mubr.msk.f32.mxu1 %vm1504_vm0, %v1503_v0  ;;  %v70_v3 = vld [vmem:[%s1903_s1] sm:$0x3]  ;;  %v155_v8 = vld [vmem:[%s1911_s9 + $0x8] sm:$0xff]  ;;  %v1410_v9 = vld [vmem:[%s1904_s2 + $0x18] sm:$0xff]   ;;  %s1508_s1 = smov 12   ;;  %s1509_s7 = smov 16  }
  0x2a   :  { %1270 = vmatpush3.msra.mxu0 %v71_v2  ;;  %v1407_v4 = vld [vmem:[%s1904_s2] sm:$0xff]   ;;  %v156_v11 = vld [vmem:[%s1911_s9 + $0x10] sm:$0xff]  ;;  %v157_v12 = vld [vmem:[%s1911_s9 + $0x18] sm:$0xff]  ;;  %s1510_s15 = smov 20   ;;  %s1511_s16 = smov 124   ;;  %vm419_vm4 = vcmask 31744  }
  0x2b   :  { %1272 = vmatmul.mubr.msk.f32.vlgmr.msra.gmra.mrb[0].mxu0 %vm79_vm1, %v70_v3  ;;  %1289 = vmatprep.subr.bf16.mxu0 %v1503_v0  ;;  %v154_v7 = vld [vmem:[%s1911_s9] sm:$0xff]  ;;  %v1343_v13 = vpack.c.bf16 %v157_v12, %v156_v11  ;;  %v1412_v15 = vld [vmem:[%s1904_s2 + $0x28] sm:$0xff]   ;;  %v1413_v16 = vld [vmem:[%s1904_s2 + $0x30] sm:$0xff]   ;;  %vm422_vm5 = vcmask 97280   ;;  %vm424_vm6 = vcmask 130048   ;;  %vm426_vm7 = vcmask 162816  }
  0x2c   :  { %1290 = vmatpush3.bf16.msra.mxu0 %v1407_v4  ;;  %1305 = vmatprep.mubr.msk.bf16.mxu0 %vm1504_vm0, %v1503_v0  ;;  %v1340_v10 = vpack.c.bf16 %v155_v8, %v154_v7  ;;  %v1411_v14 = vld [vmem:[%s1904_s2 + $0x20] sm:$0xff]   ;;  %v1414_v17 = vld [vmem:[%s1904_s2 + $0x38] sm:$0xff]   ;;  %v1676_v19 = vld [vmem:[%s1902_s0 + $0x8] sm:$0xff]  ;;  %vm428_vm8 = vcmask 195584   ;;  %vm430_vm9 = vcmask 228352   ;;  %s1514_s12 = smov 120  }
  0x2d   :  { %1291 = vmatprep.subr.bf16.mxu0 %v1503_v0  ;;  %v1671_v18 = vld [vmem:[%s1902_s0] sm:$0xff]  ;;  %v159_v22 = vld [vmem:[%s1911_s9 + $0x28] sm:$0xff]  ;;  %s1513_s0 = smov 96   ;;  %s1516_s2 = smov 112   ;;  %vm1084_vm10 = vcmask 523264   ;;  %vm1086_vm11 = vcmask 654336  }
  0x2e   :  { %1341 = vmatpush3.bf16.msra.mxu1 %v1340_v10  ;;  %v242_v20 = vpack.c.bf16 %v1676_v19, %v1671_v18  ;;  %v158_v21 = vld [vmem:[%s1911_s9 + $0x20] sm:$0xff]  ;;  %s1518_s21 = smov 48   ;;  %s1519_s22 = smov 80   ;;  %vm1088_vm12 = vcmask 785408   ;;  %vm1090_vm13 = vcmask 916480  }
  0x2f   :  { %1342 = vmatprep.subr.bf16.mxu1 %v1505_v1  ;;  %v1346_v23 = vpack.c.bf16 %v159_v22, %v158_v21  ;;  %v1215_v24 = vld [vmem:[%s1910_s8] ss:$0 sm:$0xff] }
  0x30   :  { %1292 = vmatpush3.bf16.msra.mxu0 %v1408_v5  ;;  %v1217_v59 = vld [vmem:[%s1912_s10] ss:$0 sm:$0xff]  ;;  %s1507_s10 = smov 28  }
  0x31   :  { %1293 = vmatprep.subr.bf16.mxu0 %v1503_v0  ;;  %v1415_v5 = vld [vmem:[%s1905_s3] sm:$0xff]  }
  0x32   :  { %1344 = vmatpush3.bf16.msra.mxu1 %v1343_v13 }
  0x33   :  { %1345 = vmatprep.subr.bf16.mxu1 %v1505_v1 }
  0x34   :  { %1294 = vmatpush3.bf16.msra.mxu0 %v1409_v6  ;;  %v1416_v6 = vld [vmem:[%s1905_s3 + $0x8] sm:$0xff]   ;;  %s1517_s3 = smov 32  }
  0x35   :  { %1295 = vmatprep.subr.bf16.mxu0 %v1503_v0 }
  0x36   :  { %1347 = vmatpush3.bf16.msra.mxu1 %v1346_v23 }
  0x37   :  { %1309 = vmatprep.subr.bf16.mxu1 %v1503_v0 }
  0x38   :  { %1296 = vmatpush3.bf16.msra.mxu0 %v1410_v9 }
  0x39   :  { %1297 = vmatprep.subr.bf16.mxu0 %v1503_v0 }
  0x3c   :  { %1298 = vmatpush3.bf16.msra.mxu0 %v1411_v14 }
  0x3d   :  { %1299 = vmatprep.subr.bf16.mxu0 %v1503_v0 }
  0x40   :  { %1300 = vmatpush3.bf16.msra.mxu0 %v1412_v15  ;;  %v1512_v15 = vmov 1966171168  }
  0x41   :  { %1301 = vmatprep.subr.bf16.mxu0 %v1503_v0 }
  0x44   :  { %1302 = vmatpush3.bf16.msra.mxu0 %v1413_v16  ;;  %v434_v16 = vunpack.c.l.s4 %v1512_v15  ;;  %v686_v15 = vld [vmem:[#allocation5 + $0x8] sm:$0xff] }
  0x45   :  { %1303 = vmatprep.subr.bf16.mxu0 %v1503_v0 }
  0x48   :  { %1304 = vmatpush3.bf16.msra.mxu0 %v1414_v17  ;;  %v436_v17 = vlaneseq }
  0x4b   :  { %1306 = vmatmul.mubr.bf16.vlgmr.msra.gmra.mrb[4].mxu0 %v242_v20 }
  0xfe   :  { %v149_v25 = vpop.f32.mrb[0].mxu0 }
  0xff   :  { %v150_v26 = vadd.f32 %v1215_v24, %v149_v25  ;;  %v1273_v27 = vpop.f32.mrb[1].mxu0  ;;  %v435_v25 = vunpack.c.0.s8 %v434_v16 }
 0x101   :  { %v153_v28 = vmax.f32 %v150_v26, 0.0  ;;  %v437_v26 = vshrl.u32 %v436_v17, 7 }
 0x103   :  { %1287 = vmatmul.mubr.msk.f32.vlgmr.msra.gmra.mrb[0].mxu1 %vm167_vm2, %v153_v28 }
 0x104   :  { %1313 = vmatprep.mubr.msk.bf16.mxu1 %vm1504_vm0, %v1503_v0  ;;  %1310 = vmatpush3.bf16.msra.mxu1 %v1415_v5 }
 0x105   :  { %1311 = vmatprep.subr.bf16.mxu1 %v1503_v0 }
 0x108   :  { %1312 = vmatpush3.bf16.msra.mxu1 %v1416_v6 }
 0x11e   :  { %v1694_v29 = vpop.f32.mrb[4].mxu0 }
 0x11f   :  { %v361_v30 = vmul.f32 %v1694_v29, %v1694_v29  ;;  %v1307_v31 = vpop.f32.mrb[5].mxu0  ;;  %v349_v35 = vsel %vm348_vm3, %v1694_v29, 0.0 }
 0x120   :  { %v1698_v32 = vpop.f32.mrb[6].mxu0  ;;  %v1743_v31 = vsub.s32 %v435_v25, %v437_v26 }
 0x121   :  { %v362_v33 = vmul.f32 %v1698_v32, %v1698_v32  ;;  %v1308_v34 = vpop.f32.mrb[7].mxu0  ;;  %v350_v36 = vsel %vm348_vm3, %v1698_v32, 0.0  ;;  %v363_v38 = vsel %vm348_vm3, %v361_v30, 0.0 }
 0x122   :  { %v351_v37 = vadd.f32 %v350_v36, %v349_v35 }
 0x123   :  { %v364_v39 = vsel %vm348_vm3, %v362_v33, 0.0 }
 0x124   :  { %352 = vadd.xlane.f32.xlu0 %v351_v37  ;;  %v365_v40 = vadd.f32 %v364_v39, %v363_v38 }
 0x128   :  { %366 = vadd.xlane.f32.xlu0 %v365_v40 }
 0x1b1   :  { %v353_v41 = vpop.xlane.xlu0 %352 }
 0x1b2   :  { %v354_v42 = vrot.slane %v353_v41, 4 }
 0x1b4   :  { %v355_v43 = vadd.f32 %v354_v42, %v353_v41 }
 0x1b5   :  { %v367_v44 = vpop.xlane.xlu0 %366 }
 0x1b6   :  { %v356_v45 = vrot.slane %v355_v43, 2  ;;  %v368_v46 = vrot.slane %v367_v44, 4 }
 0x1b8   :  { %v369_v47 = vadd.f32 %v368_v46, %v367_v44  ;;  %v357_v48 = vadd.f32 %v356_v45, %v355_v43  ;;  %v1753_v44 = vsub.s32 0, %v437_v26 }
 0x1ba   :  { %v370_v49 = vrot.slane %v369_v47, 2  ;;  %v358_v50 = vrot.slane %v357_v48, 1 }
 0x1bc   :  { %v359_v51 = vadd.f32 %v358_v50, %v357_v48  ;;  %v371_v52 = vadd.f32 %v370_v49, %v369_v47 }
 0x1be   :  { %1360 = vpush %v359_v51  ;;  %v372_v53 = vrot.slane %v371_v52, 1 }
 0x1c0   :  { %v373_v54 = vadd.f32 %v372_v53, %v371_v52 }
 0x1c2   :  { %1362 = vpush %v373_v54 }
 0x1d6   :  { %v237_v55 = vpop.f32.mrb[0].mxu1 }
 0x1d7   :  { %v1288_v56 = vpop.f32.mrb[1].mxu1  ;;  %v1711_v60 = vadd.f32 %v1217_v59, %v237_v55 }
 0x1d9   :  { %v1714_v61 = vadd.f32 1.0, %v1711_v60 }
 0x1ef   :  { %s1361_s8 = spop %1360 }
 0x1f0   :  { %s377_s9 = smul.f32 0.001953125, %s1361_s8 }
 0x1f2   :  { %s378_s23 = smul.f32 512.0, %s377_s9  ;;  %v390_v1 = vstv %s377_s9 }
 0x1f3   :  { %s1363_s25 = spop %1362 }
 0x1f4   :  { %s379_s24 = smul.f32 %s378_s23, %s377_s9 }
 0x1f6   :  { %s380_s26 = ssub.f32 %s1363_s25, %s379_s24 }
 0x1f8   :  { %s383_s6 = smul.f32 0.0019569471, %s380_s26 }
 0x1fa   :  { %s384_s29 = sadd.f32 1e-05, %s383_s6 }
 0x1fc   :  { %v385_v57 = vstv %s384_s29 }
 0x1fd   :  { %1419 = vrsqrt.f32 %v385_v57 }
 0x207   :  { %v1420_v58 = vpop.eup %1419 }
 0x208   :  { %1364 = vpush %v1420_v58 }
 0x239   :  { %s1365_s13 = spop %1364 }
 0x23a   :  { %v388_v62 = vstv %s1365_s13  ;;  %s1515_s13 = smov 116  }
 0x23b   :  { %v389_v63 = vmul.f32 %v388_v62, %v1714_v61 }
 0x23d   :  { %401 = vrot.lane.b32.xlu0 %v389_v63, %s1502_s18  ;;  %v391_v2 = vmul.f32 %v390_v1, %v389_v63 }
 0x23f   :  { %393 = vrot.lane.b32.xlu1 %v391_v2, %s1499_s28 }
 0x241   :  { %413 = vrot.lane.b32.xlu0 %v389_v63, %s1506_s14 }
 0x243   :  { %398 = vrot.lane.b32.xlu1 %v389_v63, %s1499_s28 }
 0x245   :  { %416 = vrot.lane.b32.xlu0 %v389_v63, %s1507_s10 }
 0x247   :  { %404 = vrot.lane.b32.xlu1 %v389_v63, %s1508_s1 }
 0x24b   :  { %407 = vrot.lane.b32.xlu1 %v389_v63, %s1509_s7 }
 0x24f   :  { %410 = vrot.lane.b32.xlu1 %v389_v63, %s1510_s15 }
 0x2af   :  { %v402_v10 = vpop.permute.xlu0 %401 }
 0x2b1   :  { %v394_v3 = vpop.permute.xlu1 %393 }
 0x2b2   :  { %v396_v4 = vsub.f32 %v1711_v60, %v394_v3 }
 0x2b3   :  { %v414_v21 = vpop.permute.xlu0 %413 }
 0x2b4   :  { %483 = vrot.lane.b32.xlu0 %v396_v4, %s1510_s15  ;;  %468 = vrot.lane.b32.xlu1 %v396_v4, %s1511_s16 }
 0x2b5   :  { %v399_v7 = vpop.permute.xlu1 %398 }
 0x2b6   :  { %v420_v12 = vsel %vm419_vm4, %v389_v63, %v399_v7 }
 0x2b7   :  { %v421_v13 = vsel %vm79_vm1, %v420_v12, %v402_v10  ;;  %v417_v28 = vpop.permute.xlu0 %416  ;;  %v595_v10 = vld [vmem:[%s1907_s5 + $0x8] sm:$0xff] }
 0x2b8   :  { %471 = vrot.lane.b32.xlu1 %v396_v4, %s1499_s28 }
 0x2b9   :  { %v405_v8 = vpop.permute.xlu1 %404 }
 0x2ba   :  { %v423_v20 = vsel %vm422_vm5, %v421_v13, %v405_v8 }
 0x2bc   :  { %474 = vrot.lane.b32.xlu1 %v396_v4, %s1502_s18 }
 0x2bd   :  { %v408_v9 = vpop.permute.xlu1 %407 }
 0x2be   :  { %v425_v22 = vsel %vm424_vm6, %v423_v20, %v408_v9 }
 0x2c0   :  { %477 = vrot.lane.b32.xlu1 %v396_v4, %s1508_s1 }
 0x2c1   :  { %v411_v11 = vpop.permute.xlu1 %410 }
 0x2c2   :  { %v427_v23 = vsel %vm426_vm7, %v425_v22, %v411_v11 }
 0x2c3   :  { %v429_v27 = vsel %vm428_vm8, %v427_v23, %v414_v21 }
 0x2c4   :  { %480 = vrot.lane.b32.xlu1 %v396_v4, %s1509_s7  ;;  %v431_v33 = vsel %vm430_vm9, %v429_v27, %v417_v28 }
 0x2c5   :  { %v439_v35 = vrot.slane %v431_v33, %v1743_v31 }
 0x2c7   :  { %v440_v41 = vcombine.high %v439_v35, %v439_v35  ;;  %v447_v43 = vrot.slane %v439_v35, %v1743_v31 }
 0x2c8   :  { %486 = vrot.lane.b32.xlu1 %v396_v4, %s1506_s14 }
 0x2c9   :  { %v454_v46 = vrot.slane %v440_v41, %v1743_v31  ;;  %v458_v50 = vrot.slane %v447_v43, %v1753_v44 }
 0x2cb   :  { %v462_v52 = vrot.slane %v454_v46, %v1753_v44  ;;  %v465_v55 = vmul.f32 %v458_v50, %v1694_v29  ;;  %v685_v29 = vld [vmem:[#allocation5] sm:$0xff] }
 0x2cd   :  { %v466_v58 = vmul.f32 %v462_v52, %v1698_v32 }
 0x326   :  { %v469_v14 = vpop.permute.xlu1 %468  ;;  %v484_v45 = vpop.permute.xlu0 %483 }
 0x327   :  { %v489_v36 = vsel %vm419_vm4, %v469_v14, %v396_v4  ;;  %v594_v4 = vld [vmem:[%s1907_s5] sm:$0xff] }
 0x328   :  { %1321 = vmatprep.mubr.msk.f32.mxu0 %vm424_vm6, %v594_v4 }
 0x32a   :  { %v472_v24 = vpop.permute.xlu1 %471 }
 0x32b   :  { %v490_v37 = vsel %vm79_vm1, %v489_v36, %v472_v24 }
 0x32e   :  { %v475_v30 = vpop.permute.xlu1 %474 }
 0x32f   :  { %v491_v38 = vsel %vm422_vm5, %v490_v37, %v475_v30 }
 0x332   :  { %v478_v34 = vpop.permute.xlu1 %477 }
 0x333   :  { %v492_v39 = vsel %vm424_vm6, %v491_v38, %v478_v34 }
 0x336   :  { %v481_v40 = vpop.permute.xlu1 %480 }
 0x337   :  { %v493_v42 = vsel %vm426_vm7, %v492_v39, %v481_v40 }
 0x338   :  { %v494_v47 = vsel %vm428_vm8, %v493_v42, %v484_v45 }
 0x33a   :  { %v487_v48 = vpop.permute.xlu1 %486 }
 0x33b   :  { %v495_v49 = vsel %vm430_vm9, %v494_v47, %v487_v48 }
 0x33c   :  { %v503_v51 = vrot.slane %v495_v49, %v1743_v31 }
 0x33e   :  { %v504_v53 = vcombine.high %v503_v51, %v503_v51  ;;  %v511_v54 = vrot.slane %v503_v51, %v1743_v31 }
 0x340   :  { %v518_v56 = vrot.slane %v504_v53, %v1743_v31  ;;  %v522_v57 = vrot.slane %v511_v54, %v1753_v44 }
 0x342   :  { %v526_v59 = vrot.slane %v518_v56, %v1753_v44  ;;  %v529_v62 = vadd.f32 %v522_v57, %v465_v55 }
 0x344   :  { %v530_v63 = vadd.f32 %v526_v59, %v466_v58  ;;  %v531_v1 = vmax.f32 %v529_v62, 0.0 }
 0x346   :  { %v532_v2 = vmax.f32 %v530_v63, 0.0 }
 0x348   :  { %v533_v3 = vpack.c.bf16 %v532_v2, %v531_v1  ;;  %v1417_v1 = vld [vmem:[#allocation2] sm:$0xff]   ;;  %v1418_v2 = vld [vmem:[#allocation2 + $0x8] sm:$0xff]  }
 0x34a   :  { %1314 = vmatmul.mubr.msk.bf16.vlgmr.msra.gmra.mrb[4].mxu1 %vm348_vm3, %v533_v3 }
 0x34b   :  { %1328 = vmatprep.mubr.msk.f32.mxu1 %vm424_vm6, %v685_v29 }
 0x41d   :  { %v587_v5 = vpop.f32.mrb[4].mxu1 }
 0x41e   :  { %598 = vrot.lane.b32.xlu1 %v587_v5, %s1513_s0  ;;  %v1315_v32 = vpop.f32.mrb[5].mxu1 }
 0x41f   :  { %v590_v6 = vpop.f32.mrb[6].mxu1 }
 0x420   :  { %v1348_v7 = vpack.c.bf16 %v590_v6, %v587_v5  ;;  %v1316_v8 = vpop.f32.mrb[7].mxu1  ;;  %v1402_v9 = vpack.i.bf16 %v590_v6, %v587_v5 }
 0x422   :  { %1403 = vrot.lane.b32.xlu0 %v1402_v9, %s1498_s27  ;;  %1349 = vmatprep.subr.bf16.mxu0 %v1348_v7 }
 0x423   :  { %1351 = vmatpush3.bf16.msra.mxu0 %v1348_v7 }
 0x426   :  { %600 = vrot.lane.b32.xlu0 %v590_v6, %s1513_s0  ;;  %1322 = vmatmul.mubr.msk.f32.vlgmr.msra.gmra.mrb[2].mxu0 %vm424_vm6, %v595_v10 }
 0x490   :  { %v599_v21 = vpop.permute.xlu1 %598 }
 0x494   :  { %v1404_v11 = vpop.permute.xlu0 %1403 }
 0x495   :  { %v1406_v12 = vunpack.i.h.bf16 %v1404_v11  ;;  %v1405_v13 = vunpack.i.l.bf16 %v1404_v11 }
 0x497   :  { %v1352_v14 = vpack.c.bf16 %v1406_v12, %v1405_v13 }
 0x498   :  { %v601_v20 = vpop.permute.xlu0 %600 }
 0x499   :  { %1353 = vmatprep.subr.bf16.mxu1 %v1352_v14 }
 0x49a   :  { %1355 = vmatpush3.bf16.msra.mxu1 %v1352_v14 }
 0x49b   :  { %1331 = vmatprep.subr.bf16.mxu1 %v1503_v0 }
 0x49d   :  { %1329 = vmatmul.mubr.msk.f32.vlgmr.msra.gmra.mrb[2].mxu1 %vm424_vm6, %v686_v15 }
 0x49e   :  { %1335 = vmatprep.mubr.msk.bf16.mxu1 %vm1504_vm0, %v1503_v0  ;;  %1332 = vmatpush3.bf16.msra.mxu1 %v1417_v1 }
 0x49f   :  { %1333 = vmatprep.subr.bf16.mxu1 %v1503_v0 }
 0x4a2   :  { %1334 = vmatpush3.bf16.msra.mxu1 %v1418_v2 }
 0x4f9   :  { %v1323_v16 = vpop.f32.mrb[2].mxu0 }
 0x4fa   :  { %v676_v17 = vpop.f32.mrb[3].mxu0  ;;  %v682_v22 = vadd.f32 %v1323_v16, %v601_v20 }
 0x4fb   :  { %v677_v23 = vadd.f32 %v676_v17, %v599_v21 }
 0x570   :  { %v1330_v24 = vpop.f32.mrb[2].mxu1 }
 0x571   :  { %v1784_v25 = vadd.f32 %v1330_v24, %v682_v22  ;;  %v765_v26 = vpop.f32.mrb[3].mxu1 }
 0x572   :  { %v1786_v27 = vadd.f32 %v765_v26, %v677_v23 }
 0x573   :  { %v777_v28 = vsel %vm348_vm3, %v1784_v25, 0.0  ;;  %v789_v30 = vmul.f32 %v1784_v25, %v1784_v25 }
 0x574   :  { %v776_v33 = vsel %vm348_vm3, %v1786_v27, 0.0  ;;  %v788_v34 = vmul.f32 %v1786_v27, %v1786_v27 }
 0x575   :  { %v778_v35 = vadd.f32 %v777_v28, %v776_v33  ;;  %v791_v36 = vsel %vm348_vm3, %v789_v30, 0.0 }
 0x576   :  { %v790_v37 = vsel %vm348_vm3, %v788_v34, 0.0 }
 0x577   :  { %779 = vadd.xlane.f32.xlu1 %v778_v35  ;;  %v792_v38 = vadd.f32 %v791_v36, %v790_v37 }
 0x579   :  { %793 = vadd.xlane.f32.xlu0 %v792_v38 }
 0x604   :  { %v780_v39 = vpop.xlane.xlu1 %779 }
 0x605   :  { %v781_v40 = vrot.slane %v780_v39, 4 }
 0x606   :  { %v794_v41 = vpop.xlane.xlu0 %793 }
 0x607   :  { %v782_v42 = vadd.f32 %v781_v40, %v780_v39  ;;  %v795_v43 = vrot.slane %v794_v41, 4 }
 0x609   :  { %v783_v45 = vrot.slane %v782_v42, 2  ;;  %v796_v46 = vadd.f32 %v795_v43, %v794_v41 }
 0x60b   :  { %v797_v47 = vrot.slane %v796_v46, 2  ;;  %v784_v48 = vadd.f32 %v783_v45, %v782_v42 }
 0x60d   :  { %v785_v49 = vrot.slane %v784_v48, 1  ;;  %v798_v50 = vadd.f32 %v797_v47, %v796_v46 }
 0x60f   :  { %v786_v51 = vadd.f32 %v785_v49, %v784_v48  ;;  %v799_v52 = vrot.slane %v798_v50, 1 }
 0x611   :  { %1366 = vpush %v786_v51  ;;  %v800_v53 = vadd.f32 %v799_v52, %v798_v50 }
 0x613   :  { %1368 = vpush %v800_v53 }
 0x642   :  { %s1367_s5 = spop %1366 }
 0x643   :  { %s804_s9 = smul.f32 0.001953125, %s1367_s5 }
 0x644   :  { %s1369_s25 = spop %1368 }
 0x645   :  { %s805_s23 = smul.f32 512.0, %s804_s9  ;;  %v817_v58 = vstv %s804_s9 }
 0x647   :  { %s806_s24 = smul.f32 %s805_s23, %s804_s9 }
 0x649   :  { %s807_s26 = ssub.f32 %s1369_s25, %s806_s24 }
 0x64b   :  { %s810_s6 = smul.f32 0.0019569471, %s807_s26 }
 0x64d   :  { %s811_s29 = sadd.f32 1e-05, %s810_s6 }
 0x64f   :  { %v812_v54 = vstv %s811_s29 }
 0x650   :  { %1421 = vrsqrt.f32 %v812_v54 }
 0x65a   :  { %v1422_v55 = vpop.eup %1421 }
 0x65b   :  { %1370 = vpush %v1422_v55 }
 0x68c   :  { %s1371_s30 = spop %1370 }
 0x68d   :  { %v815_v56 = vstv %s1371_s30 }
 0x68e   :  { %v816_v57 = vmul.f32 %v815_v56, %v1714_v61 }
 0x690   :  { %825 = vrot.lane.b32.xlu1 %v816_v57, %s1514_s12  ;;  %v818_v59 = vmul.f32 %v817_v58, %v816_v57 }
 0x692   :  { %820 = vrot.lane.b32.xlu0 %v818_v59, %s1499_s28 }
 0x694   :  { %828 = vrot.lane.b32.xlu1 %v816_v57, %s1511_s16 }
 0x696   :  { %831 = vrot.lane.b32.xlu0 %v816_v57, %s1499_s28 }
 0x698   :  { %834 = vrot.lane.b32.xlu1 %v816_v57, %s1502_s18 }
 0x69a   :  { %840 = vrot.lane.b32.xlu0 %v816_v57, %s1509_s7 }
 0x69c   :  { %837 = vrot.lane.b32.xlu1 %v816_v57, %s1508_s1 }
 0x69e   :  { %843 = vrot.lane.b32.xlu0 %v816_v57, %s1510_s15 }
 0x702   :  { %v826_v3 = vpop.permute.xlu1 %825 }
 0x704   :  { %v821_v62 = vpop.permute.xlu0 %820 }
 0x705   :  { %v823_v63 = vsub.f32 %v1711_v60, %v821_v62 }
 0x706   :  { %v829_v4 = vpop.permute.xlu1 %828 }
 0x707   :  { %892 = vrot.lane.b32.xlu0 %v823_v63, %s1514_s12  ;;  %889 = vrot.lane.b32.xlu1 %v823_v63, %s1515_s13  ;;  %v846_v5 = vsel %vm419_vm4, %v826_v3, %v829_v4 }
 0x708   :  { %v832_v29 = vpop.permute.xlu0 %831  ;;  %v847_v6 = vsel %vm79_vm1, %v846_v5, %v816_v57 }
 0x709   :  { %v848_v8 = vsel %vm422_vm5, %v847_v6, %v832_v29 }
 0x70a   :  { %v835_v32 = vpop.permute.xlu1 %834 }
 0x70b   :  { %895 = vrot.lane.b32.xlu0 %v823_v63, %s1511_s16  ;;  %898 = vrot.lane.b32.xlu1 %v823_v63, %s1499_s28  ;;  %v849_v10 = vsel %vm424_vm6, %v848_v8, %v835_v32 }
 0x70c   :  { %v841_v7 = vpop.permute.xlu0 %840 }
 0x70e   :  { %v838_v9 = vpop.permute.xlu1 %837 }
 0x70f   :  { %904 = vrot.lane.b32.xlu0 %v823_v63, %s1508_s1  ;;  %901 = vrot.lane.b32.xlu1 %v823_v63, %s1502_s18  ;;  %v850_v0 = vsel %vm426_vm7, %v849_v10, %v838_v9 }
 0x710   :  { %v844_v11 = vpop.permute.xlu0 %843  ;;  %v851_v12 = vsel %vm428_vm8, %v850_v0, %v841_v7 }
 0x711   :  { %v852_v15 = vsel %vm430_vm9, %v851_v12, %v844_v11 }
 0x712   :  { %v860_v16 = vrot.slane %v852_v15, %v1743_v31 }
 0x713   :  { %907 = vrot.lane.b32.xlu1 %v823_v63, %s1509_s7 }
 0x714   :  { %v861_v26 = vcombine.high %v860_v16, %v860_v16  ;;  %v868_v34 = vrot.slane %v860_v16, %v1743_v31 }
 0x716   :  { %v875_v35 = vrot.slane %v861_v26, %v1743_v31  ;;  %v879_v39 = vrot.slane %v868_v34, %v1753_v44 }
 0x718   :  { %v883_v41 = vrot.slane %v875_v35, %v1753_v44  ;;  %v886_v45 = vmul.f32 %v879_v39, %v1786_v27 }
 0x71a   :  { %v887_v48 = vmul.f32 %v883_v41, %v1784_v25 }
 0x779   :  { %v890_v13 = vpop.permute.xlu1 %889  ;;  %v893_v14 = vpop.permute.xlu0 %892 }
 0x77a   :  { %v910_v17 = vsel %vm419_vm4, %v890_v13, %v893_v14 }
 0x77d   :  { %v899_v20 = vpop.permute.xlu1 %898  ;;  %v896_v21 = vpop.permute.xlu0 %895 }
 0x77e   :  { %v911_v22 = vsel %vm79_vm1, %v910_v17, %v896_v21 }
 0x77f   :  { %v912_v23 = vsel %vm422_vm5, %v911_v22, %v823_v63 }
 0x780   :  { %v913_v24 = vsel %vm424_vm6, %v912_v23, %v899_v20 }
 0x781   :  { %v902_v28 = vpop.permute.xlu1 %901  ;;  %v905_v33 = vpop.permute.xlu0 %904 }
 0x782   :  { %v914_v30 = vsel %vm426_vm7, %v913_v24, %v902_v28 }
 0x783   :  { %v915_v36 = vsel %vm428_vm8, %v914_v30, %v905_v33 }
 0x785   :  { %v908_v37 = vpop.permute.xlu1 %907 }
 0x786   :  { %v916_v38 = vsel %vm430_vm9, %v915_v36, %v908_v37 }
 0x787   :  { %v924_v40 = vrot.slane %v916_v38, %v1743_v31 }
 0x789   :  { %v925_v42 = vcombine.high %v924_v40, %v924_v40  ;;  %v932_v43 = vrot.slane %v924_v40, %v1743_v31 }
 0x78b   :  { %v939_v46 = vrot.slane %v925_v42, %v1743_v31  ;;  %v943_v47 = vrot.slane %v932_v43, %v1753_v44 }
 0x78d   :  { %v947_v49 = vrot.slane %v939_v46, %v1753_v44  ;;  %v950_v50 = vadd.f32 %v943_v47, %v886_v45 }
 0x78f   :  { %v951_v51 = vadd.f32 %v947_v49, %v887_v48  ;;  %v952_v52 = vmax.f32 %v950_v50, 0.0 }
 0x791   :  { %v953_v53 = vmax.f32 %v951_v51, 0.0 }
 0x793   :  { %v954_v54 = vpack.c.bf16 %v953_v53, %v952_v52 }
 0x795   :  { %1336 = vmatmul.mubr.msk.bf16.vlgmr.msra.gmra.mrb[8].mxu1 %vm348_vm3, %v954_v54 }
 0x868   :  { %v1840_v55 = vpop.f32.mrb[8].mxu1 }
 0x869   :  { %v1337_v56 = vpop.f32.mrb[9].mxu1  ;;  %v1025_v25 = vmul.f32 %v1840_v55, %v1840_v55 }
 0x86a   :  { %v1842_v57 = vpop.f32.mrb[10].mxu1 }
 0x86b   :  { %v1338_v27 = vpop.f32.mrb[11].mxu1  ;;  %v1015_v58 = vadd.f32 %v1842_v57, %v1840_v55  ;;  %v1026_v59 = vmul.f32 %v1842_v57, %v1842_v57 }
 0x86d   :  { %1016 = vadd.xlane.f32.xlu0 %v1015_v58  ;;  %v1027_v62 = vadd.f32 %v1026_v59, %v1025_v25 }
 0x86f   :  { %1028 = vadd.xlane.f32.xlu1 %v1027_v62 }
 0x8fa   :  { %v1017_v63 = vpop.xlane.xlu0 %1016 }
 0x8fb   :  { %v1018_v1 = vrot.slane %v1017_v63, 4 }
 0x8fc   :  { %v1029_v2 = vpop.xlane.xlu1 %1028 }
 0x8fd   :  { %v1019_v3 = vadd.f32 %v1018_v1, %v1017_v63  ;;  %v1030_v4 = vrot.slane %v1029_v2, 4 }
 0x8ff   :  { %v1020_v29 = vrot.slane %v1019_v3, 2  ;;  %v1031_v5 = vadd.f32 %v1030_v4, %v1029_v2 }
 0x901   :  { %v1032_v32 = vrot.slane %v1031_v5, 2  ;;  %v1021_v6 = vadd.f32 %v1020_v29, %v1019_v3 }
 0x903   :  { %v1022_v7 = vrot.slane %v1021_v6, 1  ;;  %v1033_v8 = vadd.f32 %v1032_v32, %v1031_v5 }
 0x905   :  { %v1023_v9 = vadd.f32 %v1022_v7, %v1021_v6  ;;  %v1034_v10 = vrot.slane %v1033_v8, 1 }
 0x907   :  { %1372 = vpush %v1023_v9  ;;  %v1035_v0 = vadd.f32 %v1034_v10, %v1033_v8 }
 0x909   :  { %1374 = vpush %v1035_v0 }
 0x938   :  { %s1373_s28 = spop %1372 }
 0x939   :  { %s1039_s14 = smul.f32 0.00048828125, %s1373_s28 }
 0x93a   :  { %s1375_s15 = spop %1374 }
 0x93b   :  { %s1040_s10 = smul.f32 2048.0, %s1039_s14  ;;  %v1052_v15 = vstv %s1039_s14 }
 0x93d   :  { %s1041_s1 = smul.f32 %s1040_s10, %s1039_s14 }
 0x93f   :  { %s1042_s16 = ssub.f32 %s1375_s15, %s1041_s1 }
 0x941   :  { %s1045_s17 = smul.f32 0.0004885198, %s1042_s16 }
 0x943   :  { %s1046_s19 = sadd.f32 1e-05, %s1045_s17 }
 0x945   :  { %v1047_v11 = vstv %s1046_s19 }
 0x946   :  { %1423 = vrsqrt.f32 %v1047_v11 }
 0x950   :  { %v1424_v12 = vpop.eup %1423 }
 0x951   :  { %1376 = vpush %v1424_v12 }
 0x982   :  { %s1377_s20 = spop %1376 }
 0x983   :  { %v1050_v13 = vstv %s1377_s20 }
 0x984   :  { %v1051_v14 = vmul.f32 %v1050_v13, %v1714_v61 }
 0x986   :  { %1060 = vrot.lane.b32.xlu1 %v1051_v14, %s1516_s2  ;;  %v1053_v16 = vmul.f32 %v1052_v15, %v1051_v14 }
 0x988   :  { %1055 = vrot.lane.b32.xlu0 %v1053_v16, %s1509_s7 }
 0x98a   :  { %1066 = vrot.lane.b32.xlu1 %v1051_v14, %s1517_s3 }
 0x98c   :  { %1063 = vrot.lane.b32.xlu0 %v1051_v14, %s1509_s7 }
 0x98e   :  { %1072 = vrot.lane.b32.xlu1 %v1051_v14, %s1498_s27 }
 0x990   :  { %1069 = vrot.lane.b32.xlu0 %v1051_v14, %s1518_s21 }
 0x992   :  { %1075 = vrot.lane.b32.xlu1 %v1051_v14, %s1519_s22 }
 0x9f8   :  { %v1061_v61 = vpop.permute.xlu1 %1060 }
 0x9f9   :  { %v1081_v24 = vsel %vm424_vm6, %v1061_v61, %v1051_v14 }
 0x9fa   :  { %v1056_v17 = vpop.permute.xlu0 %1055 }
 0x9fb   :  { %v1058_v20 = vsub.f32 %v1711_v60, %v1056_v17 }
 0x9fc   :  { %v1067_v21 = vpop.permute.xlu1 %1066 }
 0x9fd   :  { %1131 = vrot.lane.b32.xlu1 %v1058_v20, %s1516_s2  ;;  %1128 = vrot.lane.b32.xlu0 %v1058_v20, %s1513_s0 }
 0x9fe   :  { %v1064_v22 = vpop.permute.xlu0 %1063 }
 0x9ff   :  { %v1082_v60 = vsel %vm348_vm3, %v1081_v24, %v1064_v22 }
 0xa00   :  { %v1073_v23 = vpop.permute.xlu1 %1072  ;;  %v1083_v30 = vsel %vm167_vm2, %v1082_v60, %v1067_v21 }
 0xa01   :  { %1078 = vrot.lane.b32.xlu1 %v1051_v14, %s1513_s0  ;;  %1134 = vrot.lane.b32.xlu0 %v1058_v20, %s1509_s7 }
 0xa02   :  { %v1070_v26 = vpop.permute.xlu0 %1069 }
 0xa03   :  { %v1085_v33 = vsel %vm1084_vm10, %v1083_v30, %v1070_v26 }
 0xa04   :  { %v1076_v28 = vpop.permute.xlu1 %1075  ;;  %v1087_v36 = vsel %vm1086_vm11, %v1085_v33, %v1073_v23 }
 0xa05   :  { %1143 = vrot.lane.b32.xlu1 %v1058_v20, %s1498_s27  ;;  %1137 = vrot.lane.b32.xlu0 %v1058_v20, %s1517_s3  ;;  %v1089_v37 = vsel %vm1088_vm12, %v1087_v36, %v1076_v28  ;;  %s1520_s27 = smov [#allocation7]  }
 0xa06   :  { %s1202_s7 = sshll.u32 %s1520_s27, 4  ;;  %s1203_s7 = int_to_ptr.vmem [resolvable:$true] %s1202_s7 }
 0xa07   :  { %s1469_s0 = scalar_lea.vmem %s1203_s7, 256  ;;  %p1474_p3 = scmp.lt.s32.totalorder %s1203_s7, %s1203_s7 }
 0xa08   :  { %p1470_p2 = scmp.ne.s32.totalorder %s1203_s7, %s1469_s0  ;;  %p1475_p4 = scmp.lt.s32.totalorder %s1469_s0, %s1469_s0 }
 0xa09   :  { %1140 = vrot.lane.b32.xlu0 %v1058_v20, %s1518_s21 }
 0xa0a   :  { %p1476_p5 = por %p1475_p4, %p1474_p3 }
 0xa0c   :  { %p1477_p6 = pnand %p1476_p5, %p1470_p2 }
 0xa0d   :  { %1146 = vrot.lane.b32.xlu0 %v1058_v20, %s1519_s22 }
 0xa6f   :  { %v1132_v34 = vpop.permute.xlu1 %1131  ;;  %v1129_v35 = vpop.permute.xlu0 %1128 }
 0xa70   :  { %v1149_v41 = vsel %vm424_vm6, %v1129_v35, %v1132_v34 }
 0xa71   :  { %v1150_v45 = vsel %vm348_vm3, %v1149_v41, %v1058_v20 }
 0xa73   :  { %v1079_v38 = vpop.permute.xlu1 %1078  ;;  %v1135_v39 = vpop.permute.xlu0 %1134 }
 0xa74   :  { %v1091_v40 = vsel %vm1090_vm13, %v1089_v37, %v1079_v38  ;;  %v1151_v46 = vsel %vm167_vm2, %v1150_v45, %v1135_v39 }
 0xa75   :  { %v1099_v42 = vrot.slane %v1091_v40, %v1743_v31 }
 0xa77   :  { %v1138_v43 = vpop.permute.xlu0 %1137  ;;  %v1100_v47 = vcombine.high %v1099_v42, %v1099_v42  ;;  %v1107_v51 = vrot.slane %v1099_v42, %v1743_v31  ;;  %v1144_v52 = vpop.permute.xlu1 %1143 }
 0xa78   :  { %v1152_v48 = vsel %vm1084_vm10, %v1151_v46, %v1138_v43 }
 0xa79   :  { %v1114_v53 = vrot.slane %v1100_v47, %v1743_v31  ;;  %v1118_v58 = vrot.slane %v1107_v51, %v1753_v44 }
 0xa7b   :  { %v1141_v49 = vpop.permute.xlu0 %1140  ;;  %v1122_v59 = vrot.slane %v1114_v53, %v1753_v44  ;;  %v1125_v1 = vmul.f32 %v1118_v58, %v1840_v55 }
 0xa7c   :  { %v1153_v50 = vsel %vm1086_vm11, %v1152_v48, %v1141_v49 }
 0xa7d   :  { %v1154_v54 = vsel %vm1088_vm12, %v1153_v50, %v1144_v52  ;;  %v1126_v29 = vmul.f32 %v1122_v59, %v1842_v57 }
 0xa7f   :  { %v1147_v56 = vpop.permute.xlu0 %1146 }
 0xa80   :  { %v1155_v27 = vsel %vm1090_vm13, %v1154_v54, %v1147_v56 }
 0xa81   :  { %v1163_v25 = vrot.slane %v1155_v27, %v1743_v31 }
 0xa83   :  { %v1164_v62 = vcombine.high %v1163_v25, %v1163_v25  ;;  %v1171_v63 = vrot.slane %v1163_v25, %v1743_v31 }
 0xa85   :  { %v1178_v2 = vrot.slane %v1164_v62, %v1743_v31  ;;  %v1182_v3 = vrot.slane %v1171_v63, %v1753_v44 }
 0xa87   :  { %v1186_v4 = vrot.slane %v1178_v2, %v1753_v44  ;;  %v1189_v5 = vadd.f32 %v1182_v3, %v1125_v1 }
 0xa89   :  { %v1190_v32 = vadd.f32 %v1186_v4, %v1126_v29  ;;  %v1191_v6 = vadd.f32 %v1189_v5, %v1671_v18 }
 0xa8b   :  { %v1192_v7 = vadd.f32 %v1190_v32, %v1676_v19  ;;  %v1193_v8 = vmax.f32 %v1191_v6, 0.0 }
 0xa8d   :  { %v1194_v9 = vmax.f32 %v1192_v7, 0.0  ;;  %1195 = vst [vmem:[#allocation7] sm:$0xff] %v1193_v8 }
 0xa8f   :  { %1196 = vst [vmem:[#allocation7 + $0x8] sm:$0xff] %v1194_v9 }
 0xa90   :  { %1480 = shalt.err (!%p1477_p6)
}
 0xa91   :  { %s1481_s9 = scalar_lea.hbm %s1913_s11, 256 }
 0xa92   :  { %p1482_p7 = scmp.ne.s32.totalorder %s1913_s11, %s1481_s9  ;;  %p1485_p8 = scmp.lt.u32.totalorder %s1481_s9, %s1913_s11 }
 0xa94   :  { %p1487_p9 = pnand %p1485_p8, %p1482_p7 }
 0xa96   :  { %1490 = shalt.err (!%p1487_p9)
}
 0xa97   :  { %1208 = dma.vmem_to_hbm [thread:$0]  %s1203_s7, 256, %s1913_s11, [#allocation4], %s1501_s4, %s1501_s4, %s1502_s18  }
 0xa98   :  { %1495 = dma.done.wait [#allocation4], 256  }
 0xa99   :  { %1496 = vsyncadd [#allocation4], 4294967040 }
 0xa9a   :  { %1212 = vsyncpa [#allocation3], 1 }
 0xa9b   :  { %1213 = vsyncpa [#allocation6], 1 }
 0xa9c   :  { %1214 = vsyncpa [#allocation4], 1 }

</bundles_post_ra>
